<compile_context>
chip_gen: v5e
topology: v5e:2x2
jax: 0.10.0
libtpu: 0.0.40
codegen_flags: <defaults>
</compile_context>

<pallas_src>
import functools

import jax
import jax.numpy as jnp
from jax import lax
from jax.experimental import pallas as pl
from jax.experimental.pallas import tpu as pltpu

_LN_EPS = 1e-5


def _pick_tile(n, target):
    """Largest divisor of n that is <= target (toy shapes use the full dim)."""
    t = max(1, min(int(target), int(n)))
    while n % t:
        t -= 1
    return t


def _vmem_limit_bytes(default=96 << 20):
    """Per-chip VMEM budget: ~54 MiB on v7x (64 MiB phys), ~108 MiB on v5e/v6e."""
    try:
        cap = getattr(pltpu.get_tpu_info(), "vmem_capacity_bytes", None)
        if cap:
            return int(min(cap * 0.85, 110 << 20))
    except Exception:
        pass
    return default


# --------------------------------------------------------------------------
# Kernel 1: LN1 + fused qkv + per-head q/k LayerNorm  ->  q, k, v (B,H,N,hd)
# --------------------------------------------------------------------------
def _qkv_kernel(x_ref, ln1w_ref, ln1b_ref, wqkv_ref, segm_ref, segb_ref,
                qnw_ref, qnb_ref, knw_ref, knb_ref,
                q_ref, k_ref, v_ref, *, num_heads, head_dim):
    H, hd = num_heads, head_dim
    C = H * hd

    x = x_ref[0].astype(jnp.float32)                       # (Tn, C)
    mu = jnp.mean(x, axis=-1, keepdims=True)
    var = jnp.mean((x - mu) ** 2, axis=-1, keepdims=True)
    h1 = (x - mu) * lax.rsqrt(var + _LN_EPS) * ln1w_ref[0] + ln1b_ref[0]

    qkv = jnp.dot(h1.astype(jnp.bfloat16), wqkv_ref[...],
                  preferred_element_type=jnp.float32)      # (Tn, 3C)

    seg_mean = segm_ref[...]                               # (C, H), 1/hd entries
    seg_bcast = segb_ref[...]                              # (H, C), 1.0 entries

    def headwise_ln(t, w_full, b_full):
        # Lane-dense per-head LayerNorm: grouped mean/var via segment matmuls
        # (MXU) instead of reshaping to (Tn, H, hd) and reducing on the XLU.
        mu_h = jnp.dot(t, seg_mean, preferred_element_type=jnp.float32)      # (Tn, H)
        mu_f = jnp.dot(mu_h, seg_bcast, preferred_element_type=jnp.float32)  # (Tn, C)
        d = t - mu_f
        var_h = jnp.dot(d * d, seg_mean, preferred_element_type=jnp.float32)
        var_f = jnp.dot(var_h, seg_bcast, preferred_element_type=jnp.float32)
        return d * lax.rsqrt(var_f + _LN_EPS) * w_full + b_full

    qn = headwise_ln(qkv[:, 0 * C:1 * C], qnw_ref[0], qnb_ref[0])  # scale folded
    kn = headwise_ln(qkv[:, 1 * C:2 * C], knw_ref[0], knb_ref[0])
    vv = qkv[:, 2 * C:3 * C]

    # Single heads-split here (static per-head slab stores) so the attention
    # kernel consumes heads-leading operands with no per-KV-tile transposes.
    for h in range(H):
        sl = slice(h * hd, (h + 1) * hd)
        q_ref[0, h] = qn[:, sl].astype(q_ref.dtype)
        k_ref[0, h] = kn[:, sl].astype(k_ref.dtype)
        v_ref[0, h] = vv[:, sl].astype(v_ref.dtype)


# --------------------------------------------------------------------------
# Kernel 2: flash attention (online softmax over KV tiles) + proj + residual
# --------------------------------------------------------------------------
def _attn_kernel(x_ref, q_ref, k_ref, v_ref, wproj_ref, bproj_ref, o_ref,
                 m_sc, l_sc, acc_sc, *, num_heads, head_dim):
    H, hd = num_heads, head_dim
    C = H * hd
    ki = pl.program_id(2)

    @pl.when(ki == 0)
    def _():
        m_sc[...] = jnp.full_like(m_sc, -jnp.inf)
        l_sc[...] = jnp.zeros_like(l_sc)
        acc_sc[...] = jnp.zeros_like(acc_sc)

    qh = q_ref[0]                                          # (H, Tq, hd)  bf16
    kh = k_ref[0]                                          # (H, Tkv, hd) bf16
    vh = v_ref[0]                                          # (H, Tkv, hd) bf16

    # scores for this KV tile only: (H, Tq, Tkv) -- never (H, N, N)
    s = lax.dot_general(qh, kh, (((2,), (2,)), ((0,), (0,))),
                        preferred_element_type=jnp.float32)

    m_prev = m_sc[...]
    m_new = jnp.maximum(m_prev, jnp.max(s, axis=-1, keepdims=True))
    alpha = jnp.exp(m_prev - m_new)
    p = jnp.exp(s - m_new)
    l_sc[...] = alpha * l_sc[...] + jnp.sum(p, axis=-1, keepdims=True)
    pv = lax.dot_general(p.astype(jnp.bfloat16), vh, (((2,), (1,)), ((0,), (0,))),
                         preferred_element_type=jnp.float32)   # (H, Tq, hd)
    acc_sc[...] = alpha * acc_sc[...] + pv
    m_sc[...] = m_new

    @pl.when(ki == pl.num_programs(2) - 1)
    def _():
        o = acc_sc[...] * pl.reciprocal(l_sc[...], approx=True)   # (H, Tq, hd)
        # back to lane-dense (Tq, C) exactly once per q tile
        o2 = jnp.concatenate([o[h] for h in range(H)], axis=-1)
        out = jnp.dot(o2.astype(jnp.bfloat16), wproj_ref[...],
                      preferred_element_type=jnp.float32) + bproj_ref[0]
        o_ref[0] = (x_ref[0].astype(jnp.float32) + out).astype(o_ref.dtype)


# --------------------------------------------------------------------------
# Kernel 3: LN2 + MLP streamed over hidden-dim chunks + residual
# --------------------------------------------------------------------------
def _mlp_kernel(y_ref, ln2w_ref, ln2b_ref, w1_ref, b1_ref, w2_ref, b2_ref,
                o_ref, h2_sc, acc_sc):
    hi = pl.program_id(2)

    @pl.when(hi == 0)
    def _():
        y = y_ref[0].astype(jnp.float32)
        mu = jnp.mean(y, axis=-1, keepdims=True)
        var = jnp.mean((y - mu) ** 2, axis=-1, keepdims=True)
        h2 = (y - mu) * lax.rsqrt(var + _LN_EPS) * ln2w_ref[0] + ln2b_ref[0]
        h2_sc[...] = h2.astype(h2_sc.dtype)
        acc_sc[...] = jnp.zeros_like(acc_sc)

    a = jnp.dot(h2_sc[...], w1_ref[...],
                preferred_element_type=jnp.float32) + b1_ref[0]    # (Tn, Hc)
    g = 0.5 * a * (1.0 + lax.erf(a * (2.0 ** -0.5)))               # exact GELU
    acc_sc[...] += jnp.dot(g.astype(jnp.bfloat16), w2_ref[...],
                           preferred_element_type=jnp.float32)     # (Tn, C)

    @pl.when(hi == pl.num_programs(2) - 1)
    def _():
        o_ref[0] = (y_ref[0].astype(jnp.float32) + acc_sc[...]
                    + b2_ref[0]).astype(o_ref.dtype)


# --------------------------------------------------------------------------
# Wrapper
# --------------------------------------------------------------------------
def relpos_block(x, params, *, num_heads,
                 q_tile=256, kv_tile=256, tok_tile=256, hidden_chunk=512):
    """RelPosBlock forward.  Linear weights expected in (in, out) layout."""
    B, N, C = x.shape
    H = num_heads
    hd = C // H
    hidden = params["w1"].shape[1]
    scale = hd ** (-0.5)

    # v5e: 128-multiples suffice; v6e/v7x prefer >=256 MXU tiles.
    Tq = _pick_tile(N, q_tile)
    Tkv = _pick_tile(N, kv_tile)
    Tn = _pick_tile(N, tok_tile)
    Hc = _pick_tile(hidden, hidden_chunk)

    vmem = _vmem_limit_bytes()
    f32, bf16 = jnp.float32, jnp.bfloat16

    # bf16 MXU operands (f32 accumulation inside the kernels); LN params f32.
    wqkv = params["wqkv"].astype(bf16)
    wproj = params["wproj"].astype(bf16)
    w1 = params["w1"].astype(bf16)
    w2 = params["w2"].astype(bf16)

    # Fold attention scale into q-norm affine; tile head affines to (1, C).
    qn_w = jnp.tile(params["qn_w"].astype(f32) * scale, (1, H))
    qn_b = jnp.tile(params["qn_b"].astype(f32) * scale, (1, H))
    kn_w = jnp.tile(params["kn_w"].astype(f32), (1, H))
    kn_b = jnp.tile(params["kn_b"].astype(f32), (1, H))

    # Segment matrices for lane-dense per-head LayerNorm statistics.
    head_id = jnp.arange(C, dtype=jnp.int32) // hd
    seg = (head_id[:, None] == jnp.arange(H, dtype=jnp.int32)[None, :]).astype(f32)
    seg_mean = seg / float(hd)          # (C, H)
    seg_bcast = seg.T                   # (H, C)

    const2d = lambda shape: pl.BlockSpec(shape, lambda *_: (0, 0))
    cparams = lambda sem: pltpu.CompilerParams(dimension_semantics=sem,
                                               vmem_limit_bytes=vmem)

    # --- kernel 1: q/k/v in heads-leading bf16 layout --------------------
    hqv_shape = jax.ShapeDtypeStruct((B, H, N, hd), bf16)
    q, k, v = pl.pallas_call(
        functools.partial(_qkv_kernel, num_heads=H, head_dim=hd),
        out_shape=(hqv_shape, hqv_shape, hqv_shape),
        grid_spec=pltpu.PrefetchScalarGridSpec(
            num_scalar_prefetch=0,
            grid=(B, N // Tn),
            in_specs=[
                pl.BlockSpec((1, Tn, C), lambda b, t: (b, t, 0)),   # x
                const2d((1, C)), const2d((1, C)),                   # ln1 w/b
                const2d((C, 3 * C)),                                # wqkv (bf16)
                const2d((C, H)), const2d((H, C)),                   # segment mats
                const2d((1, C)), const2d((1, C)),                   # q_norm (scaled)
                const2d((1, C)), const2d((1, C)),                   # k_norm
            ],
            out_specs=[pl.BlockSpec((1, H, Tn, hd), lambda b, t: (b, 0, t, 0))
                       for _ in range(3)],
        ),
        compiler_params=cparams(("parallel", "parallel")),
    )(x, params["ln1_w"], params["ln1_b"], wqkv, seg_mean, seg_bcast,
      qn_w, qn_b, kn_w, kn_b)

    # --- kernel 2: flash attention + proj + residual ---------------------
    y = pl.pallas_call(
        functools.partial(_attn_kernel, num_heads=H, head_dim=hd),
        out_shape=jax.ShapeDtypeStruct((B, N, C), x.dtype),
        grid_spec=pltpu.PrefetchScalarGridSpec(
            num_scalar_prefetch=0,
            grid=(B, N // Tq, N // Tkv),
            in_specs=[
                pl.BlockSpec((1, Tq, C), lambda b, qi, ki: (b, qi, 0)),          # residual
                pl.BlockSpec((1, H, Tq, hd), lambda b, qi, ki: (b, 0, qi, 0)),   # q
                pl.BlockSpec((1, H, Tkv, hd), lambda b, qi, ki: (b, 0, ki, 0)),  # k
                pl.BlockSpec((1, H, Tkv, hd), lambda b, qi, ki: (b, 0, ki, 0)),  # v
                pl.BlockSpec((C, C), lambda b, qi, ki: (0, 0)),                  # wproj
                pl.BlockSpec((1, C), lambda b, qi, ki: (0, 0)),                  # bproj
            ],
            out_specs=pl.BlockSpec((1, Tq, C), lambda b, qi, ki: (b, qi, 0)),
            scratch_shapes=[
                pltpu.VMEM((H, Tq, 1), f32),     # running max
                pltpu.VMEM((H, Tq, 1), f32),     # running denom
                pltpu.VMEM((H, Tq, hd), f32),    # output accumulator
            ],
        ),
        compiler_params=cparams(("parallel", "parallel", "arbitrary")),
    )(x, q, k, v, wproj, params["bproj"])

    # --- kernel 3: MLP streamed over hidden-dim chunks + residual --------
    out = pl.pallas_call(
        _mlp_kernel,
        out_shape=jax.ShapeDtypeStruct((B, N, C), x.dtype),
        grid_spec=pltpu.PrefetchScalarGridSpec(
            num_scalar_prefetch=0,
            grid=(B, N // Tn, hidden // Hc),
            in_specs=[
                pl.BlockSpec((1, Tn, C), lambda b, t, h: (b, t, 0)),   # y (residual)
                const2d((1, C)), const2d((1, C)),                      # ln2 w/b
                pl.BlockSpec((C, Hc), lambda b, t, h: (0, h)),         # w1 chunk
                pl.BlockSpec((1, Hc), lambda b, t, h: (0, h)),         # b1 chunk
                pl.BlockSpec((Hc, C), lambda b, t, h: (h, 0)),         # w2 chunk
                const2d((1, C)),                                       # b2
            ],
            out_specs=pl.BlockSpec((1, Tn, C), lambda b, t, h: (b, t, 0)),
            scratch_shapes=[
                pltpu.VMEM((Tn, C), bf16),   # LN2 activations (matmul operand)
                pltpu.VMEM((Tn, C), f32),    # MLP output accumulator
            ],
        ),
        compiler_params=cparams(("parallel", "parallel", "arbitrary")),
    )(y, params["ln2_w"], params["ln2_b"], w1, params["b1"], w2, params["b2"])

    return out


# --------------------------------------------------------------------------
# Pure-JAX f32 reference mirroring the PyTorch forward (eval mode)
# --------------------------------------------------------------------------
def relpos_block_ref(x, p, *, num_heads):
    B, N, C = x.shape
    hd = C // num_heads
    eps = _LN_EPS

    def ln(v, w, b):
        mu = jnp.mean(v, -1, keepdims=True)
        var = jnp.mean((v - mu) ** 2, -1, keepdims=True)
        return (v - mu) / jnp.sqrt(var + eps) * w + b

    h1 = ln(x, p["ln1_w"][0], p["ln1_b"][0])
    qkv = h1 @ p["wqkv"]
    qkv = qkv.reshape(B, N, 3, num_heads, hd).transpose(2, 0, 3, 1, 4)
    q, k, v = qkv[0], qkv[1], qkv[2]                       # (B, H, N, hd)
    q = ln(q, p["qn_w"][0], p["qn_b"][0])
    k = ln(k, p["kn_w"][0], p["kn_b"][0])
    q = q * hd ** (-0.5)
    attn = jax.nn.softmax(q @ jnp.swapaxes(k, -1, -2), axis=-1)
    o = (attn @ v).transpose(0, 2, 1, 3).reshape(B, N, C)
    o = o @ p["wproj"] + p["bproj"][0]
    x = x + o
    h2 = ln(x, p["ln2_w"][0], p["ln2_b"][0])
    a = h2 @ p["w1"] + p["b1"][0]
    g = 0.5 * a * (1.0 + lax.erf(a * 2.0 ** -0.5))
    return x + (g @ p["w2"] + p["b2"][0])


if __name__ == "__main__":
    # Small but multi-tile: exercises the online-softmax KV loop, token tiling
    # and the MLP hidden-chunk accumulation (2 steps each).
    B, N, C = 2, 16, 64
    num_heads = 4
    hd = C // num_heads
    hidden = int(C * 4.0)

    key = jax.random.PRNGKey(0)
    ks = jax.random.split(key, 8)

    x = jax.random.normal(ks[0], (B, N, C), dtype=jnp.float32)

    params = {
        "ln1_w": jnp.ones((1, C), jnp.float32),
        "ln1_b": jnp.zeros((1, C), jnp.float32),
        "wqkv": 0.05 * jax.random.normal(ks[1], (C, 3 * C), jnp.float32),
        "qn_w": jnp.ones((1, hd), jnp.float32),
        "qn_b": jnp.zeros((1, hd), jnp.float32),
        "kn_w": jnp.ones((1, hd), jnp.float32),
        "kn_b": jnp.zeros((1, hd), jnp.float32),
        "wproj": 0.05 * jax.random.normal(ks[2], (C, C), jnp.float32),
        "bproj": 0.01 * jax.random.normal(ks[3], (1, C), jnp.float32),
        "ln2_w": jnp.ones((1, C), jnp.float32),
        "ln2_b": jnp.zeros((1, C), jnp.float32),
        "w1": 0.05 * jax.random.normal(ks[4], (C, hidden), jnp.float32),
        "b1": 0.01 * jax.random.normal(ks[5], (1, hidden), jnp.float32),
        "w2": 0.05 * jax.random.normal(ks[6], (hidden, C), jnp.float32),
        "b2": 0.01 * jax.random.normal(ks[7], (1, C), jnp.float32),
    }

    out = relpos_block(x, params, num_heads=num_heads,
                       q_tile=8, kv_tile=8, tok_tile=8, hidden_chunk=128)
    out = jax.block_until_ready(out)

    ref = relpos_block_ref(x, params, num_heads=num_heads)
    assert out.shape == (B, N, C)
    # bf16 matmul operands / bf16 q,k,v intermediates + approx reciprocal ->
    # compare against the f32 reference with a correspondingly loose tol.
    max_err = float(jnp.max(jnp.abs(out - ref)))
    assert jnp.allclose(out, ref, atol=2e-2, rtol=2e-2), max_err
    print("KERNEL_OK")
</pallas_src>

<mosaic_0001>
module attributes {stable_mosaic.version = 11 : i64} {
  func.func @_qkv_kernel(%arg0: i32, %arg1: i32, %arg2: memref<1x8x64xf32, #tpu.memory_space<vmem>>, %arg3: memref<1x64xf32, #tpu.memory_space<vmem>>, %arg4: memref<1x64xf32, #tpu.memory_space<vmem>>, %arg5: memref<64x192xbf16, #tpu.memory_space<vmem>>, %arg6: memref<64x4xf32, #tpu.memory_space<vmem>>, %arg7: memref<4x64xf32, #tpu.memory_space<vmem>>, %arg8: memref<1x64xf32, #tpu.memory_space<vmem>>, %arg9: memref<1x64xf32, #tpu.memory_space<vmem>>, %arg10: memref<1x64xf32, #tpu.memory_space<vmem>>, %arg11: memref<1x64xf32, #tpu.memory_space<vmem>>, %arg12: memref<1x4x8x16xbf16, #tpu.memory_space<vmem>>, %arg13: memref<1x4x8x16xbf16, #tpu.memory_space<vmem>>, %arg14: memref<1x4x8x16xbf16, #tpu.memory_space<vmem>>) attributes {dimension_semantics = [#tpu.dimension_semantics<parallel>, #tpu.dimension_semantics<parallel>], iteration_bounds = array<i64: 2, 2>, scalar_prefetch = 0 : i64, scratch_operands = 0 : i64, tpu.core_type = #tpu.core_type<tc>, window_params = [{transform_indices = @transform_0, window_bounds = array<i64: 1, 8, 64>}, {pipeline_mode = #tpu.pipeline_mode<synchronous>, transform_indices = @transform_1, window_bounds = array<i64: 1, 64>}, {pipeline_mode = #tpu.pipeline_mode<synchronous>, transform_indices = @transform_2, window_bounds = array<i64: 1, 64>}, {pipeline_mode = #tpu.pipeline_mode<synchronous>, transform_indices = @transform_3, window_bounds = array<i64: 64, 192>}, {pipeline_mode = #tpu.pipeline_mode<synchronous>, transform_indices = @transform_4, window_bounds = array<i64: 64, 4>}, {pipeline_mode = #tpu.pipeline_mode<synchronous>, transform_indices = @transform_5, window_bounds = array<i64: 4, 64>}, {pipeline_mode = #tpu.pipeline_mode<synchronous>, transform_indices = @transform_6, window_bounds = array<i64: 1, 64>}, {pipeline_mode = #tpu.pipeline_mode<synchronous>, transform_indices = @transform_7, window_bounds = array<i64: 1, 64>}, {pipeline_mode = #tpu.pipeline_mode<synchronous>, transform_indices = @transform_8, window_bounds = array<i64: 1, 64>}, {pipeline_mode = #tpu.pipeline_mode<synchronous>, transform_indices = @transform_9, window_bounds = array<i64: 1, 64>}, {transform_indices = @transform_10, window_bounds = array<i64: 1, 4, 8, 16>}, {transform_indices = @transform_11, window_bounds = array<i64: 1, 4, 8, 16>}, {transform_indices = @transform_12, window_bounds = array<i64: 1, 4, 8, 16>}]} {
    %c0 = arith.constant 0 : index
    %c0_0 = arith.constant 0 : index
    %c0_1 = arith.constant 0 : index
    %0 = vector.load %arg2[%c0, %c0_0, %c0_1] : memref<1x8x64xf32, #tpu.memory_space<vmem>>, vector<1x8x64xf32>
    %1 = vector.shape_cast %0 : vector<1x8x64xf32> to vector<8x64xf32>
    %cst = arith.constant dense<0.000000e+00> : vector<8xf32>
    %2 = vector.multi_reduction <add>, %1, %cst [1] : vector<8x64xf32> to vector<8xf32>
    %3 = vector.shape_cast %2 : vector<8xf32> to vector<8x1xf32>
    %cst_2 = arith.constant 6.400000e+01 : f32
    %4 = vector.broadcast %cst_2 : f32 to vector<8x1xf32>
    %5 = arith.divf %3, %4 : vector<8x1xf32>
    %6 = vector.broadcast %5 : vector<8x1xf32> to vector<8x64xf32>
    %7 = arith.subf %1, %6 : vector<8x64xf32>
    %8 = arith.mulf %7, %7 : vector<8x64xf32>
    %cst_3 = arith.constant dense<0.000000e+00> : vector<8xf32>
    %9 = vector.multi_reduction <add>, %8, %cst_3 [1] : vector<8x64xf32> to vector<8xf32>
    %10 = vector.shape_cast %9 : vector<8xf32> to vector<8x1xf32>
    %cst_4 = arith.constant 6.400000e+01 : f32
    %11 = vector.broadcast %cst_4 : f32 to vector<8x1xf32>
    %12 = arith.divf %10, %11 : vector<8x1xf32>
    %13 = vector.broadcast %5 : vector<8x1xf32> to vector<8x64xf32>
    %14 = arith.subf %1, %13 : vector<8x64xf32>
    %cst_5 = arith.constant 9.99999974E-6 : f32
    %15 = vector.broadcast %cst_5 : f32 to vector<8x1xf32>
    %16 = arith.addf %12, %15 : vector<8x1xf32>
    %17 = math.rsqrt %16 : vector<8x1xf32>
    %18 = vector.broadcast %17 : vector<8x1xf32> to vector<8x64xf32>
    %19 = arith.mulf %14, %18 : vector<8x64xf32>
    %c0_6 = arith.constant 0 : index
    %c0_7 = arith.constant 0 : index
    %20 = vector.load %arg3[%c0_6, %c0_7] : memref<1x64xf32, #tpu.memory_space<vmem>>, vector<1x64xf32>
    %21 = vector.shape_cast %20 : vector<1x64xf32> to vector<64xf32>
    %22 = vector.shape_cast %21 : vector<64xf32> to vector<1x64xf32>
    %23 = vector.broadcast %22 : vector<1x64xf32> to vector<8x64xf32>
    %24 = arith.mulf %19, %23 : vector<8x64xf32>
    %c0_8 = arith.constant 0 : index
    %c0_9 = arith.constant 0 : index
    %25 = vector.load %arg4[%c0_8, %c0_9] : memref<1x64xf32, #tpu.memory_space<vmem>>, vector<1x64xf32>
    %26 = vector.shape_cast %25 : vector<1x64xf32> to vector<64xf32>
    %27 = vector.shape_cast %26 : vector<64xf32> to vector<1x64xf32>
    %28 = vector.broadcast %27 : vector<1x64xf32> to vector<8x64xf32>
    %29 = arith.addf %24, %28 : vector<8x64xf32>
    %30 = arith.truncf %29 : vector<8x64xf32> to vector<8x64xbf16>
    %c0_10 = arith.constant 0 : index
    %c0_11 = arith.constant 0 : index
    %31 = vector.load %arg5[%c0_10, %c0_11] : memref<64x192xbf16, #tpu.memory_space<vmem>>, vector<64x192xbf16>
    %cst_12 = arith.constant dense<0.000000e+00> : vector<8x192xf32>
    %32 = tpu.matmul %30, %31, %cst_12 {dimension_numbers = #tpu.dot_dimension_numbers<[1], [0], [0], [1], [0, 0, 1, 1], [], []>} : vector<8x64xbf16>, vector<64x192xbf16>, vector<8x192xf32> -> vector<8x192xf32>
    %c0_13 = arith.constant 0 : index
    %c0_14 = arith.constant 0 : index
    %33 = vector.load %arg6[%c0_13, %c0_14] : memref<64x4xf32, #tpu.memory_space<vmem>>, vector<64x4xf32>
    %c0_15 = arith.constant 0 : index
    %c0_16 = arith.constant 0 : index
    %34 = vector.load %arg7[%c0_15, %c0_16] : memref<4x64xf32, #tpu.memory_space<vmem>>, vector<4x64xf32>
    %35 = vector.extract_strided_slice %32 {offsets = [0, 0], sizes = [8, 64], strides = [1, 1]} : vector<8x192xf32> to vector<8x64xf32>
    %c0_17 = arith.constant 0 : index
    %c0_18 = arith.constant 0 : index
    %36 = vector.load %arg8[%c0_17, %c0_18] : memref<1x64xf32, #tpu.memory_space<vmem>>, vector<1x64xf32>
    %37 = vector.shape_cast %36 : vector<1x64xf32> to vector<64xf32>
    %c0_19 = arith.constant 0 : index
    %c0_20 = arith.constant 0 : index
    %38 = vector.load %arg9[%c0_19, %c0_20] : memref<1x64xf32, #tpu.memory_space<vmem>>, vector<1x64xf32>
    %39 = vector.shape_cast %38 : vector<1x64xf32> to vector<64xf32>
    %cst_21 = arith.constant dense<0.000000e+00> : vector<8x4xf32>
    %40 = tpu.matmul %35, %33, %cst_21 {dimension_numbers = #tpu.dot_dimension_numbers<[1], [0], [0], [1], [0, 0, 1, 1], [], []>} : vector<8x64xf32>, vector<64x4xf32>, vector<8x4xf32> -> vector<8x4xf32>
    %cst_22 = arith.constant dense<0.000000e+00> : vector<8x64xf32>
    %41 = tpu.matmul %40, %34, %cst_22 {dimension_numbers = #tpu.dot_dimension_numbers<[1], [0], [0], [1], [0, 0, 1, 1], [], []>} : vector<8x4xf32>, vector<4x64xf32>, vector<8x64xf32> -> vector<8x64xf32>
    %42 = arith.subf %35, %41 : vector<8x64xf32>
    %43 = arith.mulf %42, %42 : vector<8x64xf32>
    %cst_23 = arith.constant dense<0.000000e+00> : vector<8x4xf32>
    %44 = tpu.matmul %43, %33, %cst_23 {dimension_numbers = #tpu.dot_dimension_numbers<[1], [0], [0], [1], [0, 0, 1, 1], [], []>} : vector<8x64xf32>, vector<64x4xf32>, vector<8x4xf32> -> vector<8x4xf32>
    %cst_24 = arith.constant dense<0.000000e+00> : vector<8x64xf32>
    %45 = tpu.matmul %44, %34, %cst_24 {dimension_numbers = #tpu.dot_dimension_numbers<[1], [0], [0], [1], [0, 0, 1, 1], [], []>} : vector<8x4xf32>, vector<4x64xf32>, vector<8x64xf32> -> vector<8x64xf32>
    %cst_25 = arith.constant 9.99999974E-6 : f32
    %46 = vector.broadcast %cst_25 : f32 to vector<8x64xf32>
    %47 = arith.addf %45, %46 : vector<8x64xf32>
    %48 = math.rsqrt %47 : vector<8x64xf32>
    %49 = arith.mulf %42, %48 : vector<8x64xf32>
    %50 = vector.shape_cast %37 : vector<64xf32> to vector<1x64xf32>
    %51 = vector.broadcast %50 : vector<1x64xf32> to vector<8x64xf32>
    %52 = arith.mulf %49, %51 : vector<8x64xf32>
    %53 = vector.shape_cast %39 : vector<64xf32> to vector<1x64xf32>
    %54 = vector.broadcast %53 : vector<1x64xf32> to vector<8x64xf32>
    %55 = arith.addf %52, %54 : vector<8x64xf32>
    %56 = vector.extract_strided_slice %32 {offsets = [0, 64], sizes = [8, 64], strides = [1, 1]} : vector<8x192xf32> to vector<8x64xf32>
    %c0_26 = arith.constant 0 : index
    %c0_27 = arith.constant 0 : index
    %57 = vector.load %arg10[%c0_26, %c0_27] : memref<1x64xf32, #tpu.memory_space<vmem>>, vector<1x64xf32>
    %58 = vector.shape_cast %57 : vector<1x64xf32> to vector<64xf32>
    %c0_28 = arith.constant 0 : index
    %c0_29 = arith.constant 0 : index
    %59 = vector.load %arg11[%c0_28, %c0_29] : memref<1x64xf32, #tpu.memory_space<vmem>>, vector<1x64xf32>
    %60 = vector.shape_cast %59 : vector<1x64xf32> to vector<64xf32>
    %cst_30 = arith.constant dense<0.000000e+00> : vector<8x4xf32>
    %61 = tpu.matmul %56, %33, %cst_30 {dimension_numbers = #tpu.dot_dimension_numbers<[1], [0], [0], [1], [0, 0, 1, 1], [], []>} : vector<8x64xf32>, vector<64x4xf32>, vector<8x4xf32> -> vector<8x4xf32>
    %cst_31 = arith.constant dense<0.000000e+00> : vector<8x64xf32>
    %62 = tpu.matmul %61, %34, %cst_31 {dimension_numbers = #tpu.dot_dimension_numbers<[1], [0], [0], [1], [0, 0, 1, 1], [], []>} : vector<8x4xf32>, vector<4x64xf32>, vector<8x64xf32> -> vector<8x64xf32>
    %63 = arith.subf %56, %62 : vector<8x64xf32>
    %64 = arith.mulf %63, %63 : vector<8x64xf32>
    %cst_32 = arith.constant dense<0.000000e+00> : vector<8x4xf32>
    %65 = tpu.matmul %64, %33, %cst_32 {dimension_numbers = #tpu.dot_dimension_numbers<[1], [0], [0], [1], [0, 0, 1, 1], [], []>} : vector<8x64xf32>, vector<64x4xf32>, vector<8x4xf32> -> vector<8x4xf32>
    %cst_33 = arith.constant dense<0.000000e+00> : vector<8x64xf32>
    %66 = tpu.matmul %65, %34, %cst_33 {dimension_numbers = #tpu.dot_dimension_numbers<[1], [0], [0], [1], [0, 0, 1, 1], [], []>} : vector<8x4xf32>, vector<4x64xf32>, vector<8x64xf32> -> vector<8x64xf32>
    %cst_34 = arith.constant 9.99999974E-6 : f32
    %67 = vector.broadcast %cst_34 : f32 to vector<8x64xf32>
    %68 = arith.addf %66, %67 : vector<8x64xf32>
    %69 = math.rsqrt %68 : vector<8x64xf32>
    %70 = arith.mulf %63, %69 : vector<8x64xf32>
    %71 = vector.shape_cast %58 : vector<64xf32> to vector<1x64xf32>
    %72 = vector.broadcast %71 : vector<1x64xf32> to vector<8x64xf32>
    %73 = arith.mulf %70, %72 : vector<8x64xf32>
    %74 = vector.shape_cast %60 : vector<64xf32> to vector<1x64xf32>
    %75 = vector.broadcast %74 : vector<1x64xf32> to vector<8x64xf32>
    %76 = arith.addf %73, %75 : vector<8x64xf32>
    %77 = vector.extract_strided_slice %32 {offsets = [0, 128], sizes = [8, 64], strides = [1, 1]} : vector<8x192xf32> to vector<8x64xf32>
    %78 = vector.extract_strided_slice %55 {offsets = [0, 0], sizes = [8, 16], strides = [1, 1]} : vector<8x64xf32> to vector<8x16xf32>
    %79 = arith.truncf %78 : vector<8x16xf32> to vector<8x16xbf16>
    %c0_35 = arith.constant 0 : index
    %c0_36 = arith.constant 0 : index
    %c0_37 = arith.constant 0 : index
    %c0_38 = arith.constant 0 : index
    %80 = vector.load %arg12[%c0_35, %c0_36, %c0_37, %c0_38] : memref<1x4x8x16xbf16, #tpu.memory_space<vmem>>, vector<1x1x8x16xbf16>
    %81 = vector.shape_cast %80 : vector<1x1x8x16xbf16> to vector<8x16xbf16>
    %82 = vector.shape_cast %79 : vector<8x16xbf16> to vector<1x1x8x16xbf16>
    tpu.vector_store %arg12[%c0_35, %c0_36, %c0_37, %c0_38], %82 {strides = array<i32>} : memref<1x4x8x16xbf16, #tpu.memory_space<vmem>>, vector<1x1x8x16xbf16>,
    %83 = vector.extract_strided_slice %76 {offsets = [0, 0], sizes = [8, 16], strides = [1, 1]} : vector<8x64xf32> to vector<8x16xf32>
    %84 = arith.truncf %83 : vector<8x16xf32> to vector<8x16xbf16>
    %c0_39 = arith.constant 0 : index
    %c0_40 = arith.constant 0 : index
    %c0_41 = arith.constant 0 : index
    %c0_42 = arith.constant 0 : index
    %85 = vector.load %arg13[%c0_39, %c0_40, %c0_41, %c0_42] : memref<1x4x8x16xbf16, #tpu.memory_space<vmem>>, vector<1x1x8x16xbf16>
    %86 = vector.shape_cast %85 : vector<1x1x8x16xbf16> to vector<8x16xbf16>
    %87 = vector.shape_cast %84 : vector<8x16xbf16> to vector<1x1x8x16xbf16>
    tpu.vector_store %arg13[%c0_39, %c0_40, %c0_41, %c0_42], %87 {strides = array<i32>} : memref<1x4x8x16xbf16, #tpu.memory_space<vmem>>, vector<1x1x8x16xbf16>,
    %88 = vector.extract_strided_slice %77 {offsets = [0, 0], sizes = [8, 16], strides = [1, 1]} : vector<8x64xf32> to vector<8x16xf32>
    %89 = arith.truncf %88 : vector<8x16xf32> to vector<8x16xbf16>
    %c0_43 = arith.constant 0 : index
    %c0_44 = arith.constant 0 : index
    %c0_45 = arith.constant 0 : index
    %c0_46 = arith.constant 0 : index
    %90 = vector.load %arg14[%c0_43, %c0_44, %c0_45, %c0_46] : memref<1x4x8x16xbf16, #tpu.memory_space<vmem>>, vector<1x1x8x16xbf16>
    %91 = vector.shape_cast %90 : vector<1x1x8x16xbf16> to vector<8x16xbf16>
    %92 = vector.shape_cast %89 : vector<8x16xbf16> to vector<1x1x8x16xbf16>
    tpu.vector_store %arg14[%c0_43, %c0_44, %c0_45, %c0_46], %92 {strides = array<i32>} : memref<1x4x8x16xbf16, #tpu.memory_space<vmem>>, vector<1x1x8x16xbf16>,
    %93 = vector.extract_strided_slice %55 {offsets = [0, 16], sizes = [8, 16], strides = [1, 1]} : vector<8x64xf32> to vector<8x16xf32>
    %94 = arith.truncf %93 : vector<8x16xf32> to vector<8x16xbf16>
    %c0_47 = arith.constant 0 : index
    %c1 = arith.constant 1 : index
    %c0_48 = arith.constant 0 : index
    %c0_49 = arith.constant 0 : index
    %95 = vector.load %arg12[%c0_47, %c1, %c0_48, %c0_49] : memref<1x4x8x16xbf16, #tpu.memory_space<vmem>>, vector<1x1x8x16xbf16>
    %96 = vector.shape_cast %95 : vector<1x1x8x16xbf16> to vector<8x16xbf16>
    %97 = vector.shape_cast %94 : vector<8x16xbf16> to vector<1x1x8x16xbf16>
    tpu.vector_store %arg12[%c0_47, %c1, %c0_48, %c0_49], %97 {strides = array<i32>} : memref<1x4x8x16xbf16, #tpu.memory_space<vmem>>, vector<1x1x8x16xbf16>,
    %98 = vector.extract_strided_slice %76 {offsets = [0, 16], sizes = [8, 16], strides = [1, 1]} : vector<8x64xf32> to vector<8x16xf32>
    %99 = arith.truncf %98 : vector<8x16xf32> to vector<8x16xbf16>
    %c0_50 = arith.constant 0 : index
    %c1_51 = arith.constant 1 : index
    %c0_52 = arith.constant 0 : index
    %c0_53 = arith.constant 0 : index
    %100 = vector.load %arg13[%c0_50, %c1_51, %c0_52, %c0_53] : memref<1x4x8x16xbf16, #tpu.memory_space<vmem>>, vector<1x1x8x16xbf16>
    %101 = vector.shape_cast %100 : vector<1x1x8x16xbf16> to vector<8x16xbf16>
    %102 = vector.shape_cast %99 : vector<8x16xbf16> to vector<1x1x8x16xbf16>
    tpu.vector_store %arg13[%c0_50, %c1_51, %c0_52, %c0_53], %102 {strides = array<i32>} : memref<1x4x8x16xbf16, #tpu.memory_space<vmem>>, vector<1x1x8x16xbf16>,
    %103 = vector.extract_strided_slice %77 {offsets = [0, 16], sizes = [8, 16], strides = [1, 1]} : vector<8x64xf32> to vector<8x16xf32>
    %104 = arith.truncf %103 : vector<8x16xf32> to vector<8x16xbf16>
    %c0_54 = arith.constant 0 : index
    %c1_55 = arith.constant 1 : index
    %c0_56 = arith.constant 0 : index
    %c0_57 = arith.constant 0 : index
    %105 = vector.load %arg14[%c0_54, %c1_55, %c0_56, %c0_57] : memref<1x4x8x16xbf16, #tpu.memory_space<vmem>>, vector<1x1x8x16xbf16>
    %106 = vector.shape_cast %105 : vector<1x1x8x16xbf16> to vector<8x16xbf16>
    %107 = vector.shape_cast %104 : vector<8x16xbf16> to vector<1x1x8x16xbf16>
    tpu.vector_store %arg14[%c0_54, %c1_55, %c0_56, %c0_57], %107 {strides = array<i32>} : memref<1x4x8x16xbf16, #tpu.memory_space<vmem>>, vector<1x1x8x16xbf16>,
    %108 = vector.extract_strided_slice %55 {offsets = [0, 32], sizes = [8, 16], strides = [1, 1]} : vector<8x64xf32> to vector<8x16xf32>
    %109 = arith.truncf %108 : vector<8x16xf32> to vector<8x16xbf16>
    %c0_58 = arith.constant 0 : index
    %c2 = arith.constant 2 : index
    %c0_59 = arith.constant 0 : index
    %c0_60 = arith.constant 0 : index
    %110 = vector.load %arg12[%c0_58, %c2, %c0_59, %c0_60] : memref<1x4x8x16xbf16, #tpu.memory_space<vmem>>, vector<1x1x8x16xbf16>
    %111 = vector.shape_cast %110 : vector<1x1x8x16xbf16> to vector<8x16xbf16>
    %112 = vector.shape_cast %109 : vector<8x16xbf16> to vector<1x1x8x16xbf16>
    tpu.vector_store %arg12[%c0_58, %c2, %c0_59, %c0_60], %112 {strides = array<i32>} : memref<1x4x8x16xbf16, #tpu.memory_space<vmem>>, vector<1x1x8x16xbf16>,
    %113 = vector.extract_strided_slice %76 {offsets = [0, 32], sizes = [8, 16], strides = [1, 1]} : vector<8x64xf32> to vector<8x16xf32>
    %114 = arith.truncf %113 : vector<8x16xf32> to vector<8x16xbf16>
    %c0_61 = arith.constant 0 : index
    %c2_62 = arith.constant 2 : index
    %c0_63 = arith.constant 0 : index
    %c0_64 = arith.constant 0 : index
    %115 = vector.load %arg13[%c0_61, %c2_62, %c0_63, %c0_64] : memref<1x4x8x16xbf16, #tpu.memory_space<vmem>>, vector<1x1x8x16xbf16>
    %116 = vector.shape_cast %115 : vector<1x1x8x16xbf16> to vector<8x16xbf16>
    %117 = vector.shape_cast %114 : vector<8x16xbf16> to vector<1x1x8x16xbf16>
    tpu.vector_store %arg13[%c0_61, %c2_62, %c0_63, %c0_64], %117 {strides = array<i32>} : memref<1x4x8x16xbf16, #tpu.memory_space<vmem>>, vector<1x1x8x16xbf16>,
    %118 = vector.extract_strided_slice %77 {offsets = [0, 32], sizes = [8, 16], strides = [1, 1]} : vector<8x64xf32> to vector<8x16xf32>
    %119 = arith.truncf %118 : vector<8x16xf32> to vector<8x16xbf16>
    %c0_65 = arith.constant 0 : index
    %c2_66 = arith.constant 2 : index
    %c0_67 = arith.constant 0 : index
    %c0_68 = arith.constant 0 : index
    %120 = vector.load %arg14[%c0_65, %c2_66, %c0_67, %c0_68] : memref<1x4x8x16xbf16, #tpu.memory_space<vmem>>, vector<1x1x8x16xbf16>
    %121 = vector.shape_cast %120 : vector<1x1x8x16xbf16> to vector<8x16xbf16>
    %122 = vector.shape_cast %119 : vector<8x16xbf16> to vector<1x1x8x16xbf16>
    tpu.vector_store %arg14[%c0_65, %c2_66, %c0_67, %c0_68], %122 {strides = array<i32>} : memref<1x4x8x16xbf16, #tpu.memory_space<vmem>>, vector<1x1x8x16xbf16>,
    %123 = vector.extract_strided_slice %55 {offsets = [0, 48], sizes = [8, 16], strides = [1, 1]} : vector<8x64xf32> to vector<8x16xf32>
    %124 = arith.truncf %123 : vector<8x16xf32> to vector<8x16xbf16>
    %c0_69 = arith.constant 0 : index
    %c3 = arith.constant 3 : index
    %c0_70 = arith.constant 0 : index
    %c0_71 = arith.constant 0 : index
    %125 = vector.load %arg12[%c0_69, %c3, %c0_70, %c0_71] : memref<1x4x8x16xbf16, #tpu.memory_space<vmem>>, vector<1x1x8x16xbf16>
    %126 = vector.shape_cast %125 : vector<1x1x8x16xbf16> to vector<8x16xbf16>
    %127 = vector.shape_cast %124 : vector<8x16xbf16> to vector<1x1x8x16xbf16>
    tpu.vector_store %arg12[%c0_69, %c3, %c0_70, %c0_71], %127 {strides = array<i32>} : memref<1x4x8x16xbf16, #tpu.memory_space<vmem>>, vector<1x1x8x16xbf16>,
    %128 = vector.extract_strided_slice %76 {offsets = [0, 48], sizes = [8, 16], strides = [1, 1]} : vector<8x64xf32> to vector<8x16xf32>
    %129 = arith.truncf %128 : vector<8x16xf32> to vector<8x16xbf16>
    %c0_72 = arith.constant 0 : index
    %c3_73 = arith.constant 3 : index
    %c0_74 = arith.constant 0 : index
    %c0_75 = arith.constant 0 : index
    %130 = vector.load %arg13[%c0_72, %c3_73, %c0_74, %c0_75] : memref<1x4x8x16xbf16, #tpu.memory_space<vmem>>, vector<1x1x8x16xbf16>
    %131 = vector.shape_cast %130 : vector<1x1x8x16xbf16> to vector<8x16xbf16>
    %132 = vector.shape_cast %129 : vector<8x16xbf16> to vector<1x1x8x16xbf16>
    tpu.vector_store %arg13[%c0_72, %c3_73, %c0_74, %c0_75], %132 {strides = array<i32>} : memref<1x4x8x16xbf16, #tpu.memory_space<vmem>>, vector<1x1x8x16xbf16>,
    %133 = vector.extract_strided_slice %77 {offsets = [0, 48], sizes = [8, 16], strides = [1, 1]} : vector<8x64xf32> to vector<8x16xf32>
    %134 = arith.truncf %133 : vector<8x16xf32> to vector<8x16xbf16>
    %c0_76 = arith.constant 0 : index
    %c3_77 = arith.constant 3 : index
    %c0_78 = arith.constant 0 : index
    %c0_79 = arith.constant 0 : index
    %135 = vector.load %arg14[%c0_76, %c3_77, %c0_78, %c0_79] : memref<1x4x8x16xbf16, #tpu.memory_space<vmem>>, vector<1x1x8x16xbf16>
    %136 = vector.shape_cast %135 : vector<1x1x8x16xbf16> to vector<8x16xbf16>
    %137 = vector.shape_cast %134 : vector<8x16xbf16> to vector<1x1x8x16xbf16>
    tpu.vector_store %arg14[%c0_76, %c3_77, %c0_78, %c0_79], %137 {strides = array<i32>} : memref<1x4x8x16xbf16, #tpu.memory_space<vmem>>, vector<1x1x8x16xbf16>,
    return
  }
  func.func @transform_0(%arg0: i32, %arg1: i32) -> (i32, i32, i32) {
    %c0_i32 = arith.constant 0 : i32
    %c0_i32_0 = arith.constant 0 : i32
    return %arg0, %arg1, %c0_i32 : i32, i32, i32
  }
  func.func @transform_1(%arg0: i32, %arg1: i32) -> (i32, i32) {
    %c0_i32 = arith.constant 0 : i32
    %c0_i32_0 = arith.constant 0 : i32
    %c0_i32_1 = arith.constant 0 : i32
    return %c0_i32, %c0_i32_0 : i32, i32
  }
  func.func @transform_2(%arg0: i32, %arg1: i32) -> (i32, i32) {
    %c0_i32 = arith.constant 0 : i32
    %c0_i32_0 = arith.constant 0 : i32
    %c0_i32_1 = arith.constant 0 : i32
    return %c0_i32, %c0_i32_0 : i32, i32
  }
  func.func @transform_3(%arg0: i32, %arg1: i32) -> (i32, i32) {
    %c0_i32 = arith.constant 0 : i32
    %c0_i32_0 = arith.constant 0 : i32
    %c0_i32_1 = arith.constant 0 : i32
    return %c0_i32, %c0_i32_0 : i32, i32
  }
  func.func @transform_4(%arg0: i32, %arg1: i32) -> (i32, i32) {
    %c0_i32 = arith.constant 0 : i32
    %c0_i32_0 = arith.constant 0 : i32
    %c0_i32_1 = arith.constant 0 : i32
    return %c0_i32, %c0_i32_0 : i32, i32
  }
  func.func @transform_5(%arg0: i32, %arg1: i32) -> (i32, i32) {
    %c0_i32 = arith.constant 0 : i32
    %c0_i32_0 = arith.constant 0 : i32
    %c0_i32_1 = arith.constant 0 : i32
    return %c0_i32, %c0_i32_0 : i32, i32
  }
  func.func @transform_6(%arg0: i32, %arg1: i32) -> (i32, i32) {
    %c0_i32 = arith.constant 0 : i32
    %c0_i32_0 = arith.constant 0 : i32
    %c0_i32_1 = arith.constant 0 : i32
    return %c0_i32, %c0_i32_0 : i32, i32
  }
  func.func @transform_7(%arg0: i32, %arg1: i32) -> (i32, i32) {
    %c0_i32 = arith.constant 0 : i32
    %c0_i32_0 = arith.constant 0 : i32
    %c0_i32_1 = arith.constant 0 : i32
    return %c0_i32, %c0_i32_0 : i32, i32
  }
  func.func @transform_8(%arg0: i32, %arg1: i32) -> (i32, i32) {
    %c0_i32 = arith.constant 0 : i32
    %c0_i32_0 = arith.constant 0 : i32
    %c0_i32_1 = arith.constant 0 : i32
    return %c0_i32, %c0_i32_0 : i32, i32
  }
  func.func @transform_9(%arg0: i32, %arg1: i32) -> (i32, i32) {
    %c0_i32 = arith.constant 0 : i32
    %c0_i32_0 = arith.constant 0 : i32
    %c0_i32_1 = arith.constant 0 : i32
    return %c0_i32, %c0_i32_0 : i32, i32
  }
  func.func @transform_10(%arg0: i32, %arg1: i32) -> (i32, i32, i32, i32) {
    %c0_i32 = arith.constant 0 : i32
    %c0_i32_0 = arith.constant 0 : i32
    %c0_i32_1 = arith.constant 0 : i32
    return %arg0, %c0_i32, %arg1, %c0_i32_0 : i32, i32, i32, i32
  }
  func.func @transform_11(%arg0: i32, %arg1: i32) -> (i32, i32, i32, i32) {
    %c0_i32 = arith.constant 0 : i32
    %c0_i32_0 = arith.constant 0 : i32
    %c0_i32_1 = arith.constant 0 : i32
    return %arg0, %c0_i32, %arg1, %c0_i32_0 : i32, i32, i32, i32
  }
  func.func @transform_12(%arg0: i32, %arg1: i32) -> (i32, i32, i32, i32) {
    %c0_i32 = arith.constant 0 : i32
    %c0_i32_0 = arith.constant 0 : i32
    %c0_i32_1 = arith.constant 0 : i32
    return %arg0, %c0_i32, %arg1, %c0_i32_0 : i32, i32, i32, i32
  }
}

</mosaic_0001>

<bundles_post_ra>
// kernel: tpu_custom_call.1
= control target key start
LH: loop header
LB: loop body
LE: loop exit
PB: predicated region body
PF: predicated region fallthrough
CT: control target
= control target key end

     0   :  { %s1976_s0 = inlined_call_operand.hbm [shape: f32[2,16,64], index: 0, kind: input, shape index: {}]   ;;  %s1977_s1 = inlined_call_operand.vmem [shape: f32[1,64], index: 1, kind: input, shape index: {}]   ;;  %s1978_s2 = inlined_call_operand.vmem [shape: f32[1,64], index: 2, kind: input, shape index: {}]   ;;  %s1979_s3 = inlined_call_operand.vmem [shape: bf16[64,192], index: 3, kind: input, shape index: {}]   ;;  %s1980_s4 = inlined_call_operand.vmem [shape: f32[64,4], index: 4, kind: input, shape index: {}]   ;;  %s1981_s5 = inlined_call_operand.vmem [shape: f32[4,64], index: 5, kind: input, shape index: {}]   ;;  %s1982_s6 = inlined_call_operand.vmem [shape: f32[1,64], index: 6, kind: input, shape index: {}]   ;;  %s1983_s7 = inlined_call_operand.vmem [shape: f32[1,64], index: 7, kind: input, shape index: {}]   ;;  %s1984_s8 = inlined_call_operand.vmem [shape: f32[1,64], index: 8, kind: input, shape index: {}]   ;;  %s1985_s9 = inlined_call_operand.vmem [shape: f32[1,64], index: 9, kind: input, shape index: {}]   ;;  %s1986_s10 = inlined_call_operand.hbm [shape: bf16[2,4,16,16], index: 10, kind: output, shape index: {0}]   ;;  %s1987_s11 = inlined_call_operand.hbm [shape: bf16[2,4,16,16], index: 11, kind: output, shape index: {1}]   ;;  %s1988_s12 = inlined_call_operand.hbm [shape: bf16[2,4,16,16], index: 12, kind: output, shape index: {2}]  }
   0x1   :  { %2009 = sst [smem:[#allocation20_spill]] %s1976_s0 }
   0x2   :  { %2010 = sst [smem:[#allocation21_spill]] %s1977_s1 }
   0x3   :  { %2011 = sst [smem:[#allocation22_spill]] %s1978_s2 }
   0x4   :  { %2012 = sst [smem:[#allocation23_spill]] %s1979_s3 }
   0x5   :  { %2013 = sst [smem:[#allocation24_spill]] %s1980_s4 }
   0x6   :  { %2014 = sst [smem:[#allocation25_spill]] %s1981_s5 }
   0x7   :  { %2015 = sst [smem:[#allocation26_spill]] %s1986_s10 }
   0x8   :  { %2016 = sst [smem:[#allocation27_spill]] %s1987_s11 }
   0x9   :  { %2017 = sst [smem:[#allocation28_spill]] %s1988_s12 }
   0xa   :  { %18 = vsyncpa [#allocation3], 0 }
   0xb   :  { %20 = vsyncpa [#allocation3 + $0x1], 0 }
   0xc   :  { %21 = vsyncpa [#allocation4], 0 }
   0xd   :  { %23 = vsyncpa [#allocation4 + $0x1], 0 }
   0xe   :  { %24 = vsyncpa [#allocation7], 0 }
   0xf   :  { %26 = vsyncpa [#allocation7 + $0x1], 0  ;;  %s1589_s21 = smov 0   ;;  %s1591_s22 = smov 0  }
  0x10   :  { %s1593_s23 = smov 0   ;;  %s1595_s24 = smov 0  }
  0x11   :  { %s1597_s25 = smov 0   ;;  %s1599_s26 = smov 0  }
  0x12   :  { %s1601_s27 = smov 0   ;;  %s1603_s28 = smov 0  }
  0x13 LB: > { %2018 = sst [smem:[#allocation12_spill]] %s1484_s21  ;;  %s1630_s29 = sadd.s32 4294967295, %s1512_s28   ;;  %s1512_s28 = sphi %s1603_s28, %s32_s28   ;;  %s1508_s27 = sphi %s1601_s27, %s2059_s27   ;;  %s1504_s26 = sphi %s1599_s26, %s2058_s26   ;;  %s1500_s25 = sphi %s1597_s25, %s2057_s25   ;;  %s1496_s24 = sphi %s1595_s24, %s2056_s24   ;;  %s1492_s23 = sphi %s1593_s23, %s2055_s23   ;;  %s1488_s22 = sphi %s1591_s22, %s2054_s22   ;;  %s1484_s21 = sphi %s1589_s21, %s2053_s21  }
  0x14   : > { %2019 = sst [smem:[#allocation13_spill]] %s1496_s24  ;;  %s1998_s30 = sadd.s32 4294967294, %s1512_s28  }
  0x15   : > { %2020 = sst [smem:[#allocation14_spill]] %s1500_s25  ;;  %s41_s13 = sadd.s32 1, %s1504_s26 }
  0x16   : > { %2021 = sst [smem:[#allocation15_spill]] %s1630_s29  ;;  %s44_s14 = sadd.s32 1, %s1508_s27 }
  0x17   : > { %p42_p0 = scmp.ge.s32.totalorder %s41_s13, 2  ;;  %s53_s15 = sadd.s32 1, %s1492_s23 }
  0x18   : > { %p60_p1 = scmp.ne.s32.totalorder %s1492_s23, %s1488_s22  ;;  %p61_p2 = scmp.eq.s32.totalorder %s1512_s28, 0 }
  0x19   : > { %s2061_s13 = smov (%p42_p0, %s41_s13), 0  ;;  %s2063_s14 = smov (!%p42_p0, %s44_s14), %s1508_s27 }
  0x1a   : > { %2022 = sst [smem:[#allocation16_spill]] %s2061_s13  ;;  %s49_s16 = ssub.s32 %s1504_s26, %s2061_s13 }
  0x1b   : > { %p1644_p3 = por %p61_p2, %p60_p1  ;;  %p46_p4 = scmp.ge.s32.totalorder %s2063_s14, 2 }
  0x1c   : > { %p66_p5 = scmp.ne.s32.totalorder %s1488_s22, %s1484_s21  ;;  %p67_p6 = scmp.eq.s32.totalorder %s1630_s29, 0 }
  0x1d   : > { %p281_p7 = scmp.eq.s32.totalorder %s1630_s29, 3  ;;  %s2065_s14 = smov (%p46_p4, %s2063_s14), 0 }
  0x1e   : > { %2024 = sst [smem:[#allocation17_spill]] %s2065_s14  ;;  %p1654_p8 = por %p67_p6, %p66_p5 }
  0x1f   : > { %p1658_p9 = por %p281_p7, %p60_p1  ;;  %s48_s20 = ssub.s32 %s1508_s27, %s2065_s14 }
  0x20   : > { %p287_p10 = scmp.eq.s32.totalorder %s1998_s30, 3  ;;  %s50_s13 = sor.u32 %s49_s16, %s48_s20 }
  0x21   : > { %s2026_s19 = scalar_select %p1658_p9, 1, 0 }
  0x22   : > { %p51_p11 = scmp.eq.s32.totalorder %s50_s13, 0  ;;  %p1666_p12 = por %p287_p10, %p66_p5 }
  0x23   : > { %2027 = sst [smem:[#allocation18_spill]] %s2026_s19  ;;  %p1234_p13 = scmp.lt.s32.totalorder %s1512_s28, 4 }
  0x24   : > { %s2028_s21 = scalar_select %p1666_p12, 1, 0 }
  0x25   : > { %s390_s12 = sand.u32 1, %s1492_s23   ;;  %s1131_s10 = sshll.u32 %s1508_s27, 1 }
  0x26   : > { %2029 = sst [smem:[#allocation19_spill]] %s2028_s21  ;;  %s1130_s29 = sshll.u32 %s390_s12, 3 }
  0x27   : > { %s1673_s11 = scalar_select %p51_p11, %s1492_s23, %s53_s15  }
  0x28   : > { %s398_s24 = sadd.s32 %s1504_s26, %s1131_s10  ;;  %s394_s19 = scalar_lea.vmem [#allocation2], %s1130_s29 }
  0x29   : > { %s404_s14 = sshll.u32 %s394_s19, 4  ;;  %s1132_s25 = sshll.u32 %s398_s24, 3  ;;  %s405_s14 = int_to_ptr.vmem [resolvable:$true] %s404_s14 }
  0x2a   : > { %s2030_s0 = sld [smem:[#allocation20_spill]]  ;;  %p1221_p0 = pnand %p1234_p13, %p1644_p3 }
  0x2b   : > { %p1133_p1 = scmp.ge.s32.totalorder %s1512_s28, 1  ;;  %s391_s21 = scalar_lea.sflag [#allocation3], %s390_s12 }
  0x2c   : > { %p409_p2 = scmp.lt.s32.totalorder %s1512_s28, 5 }
  0x2e   : > { %p410_p4 = pnand %p1133_p1, %p409_p2 }
  0x2f   : > { %s1685_s10 = sand.u32 (!%p410_p4), 1, %s1488_s22  }
  0x30   : > { %s400_s13 = scalar_lea.hbm %s2030_s0, %s1132_s25  ;;  %413 = sbr.rel (%p410_p4) target bundleno = 1586 (0x632), region = 60 }
  0x31   : > { %s402_s20 = sshll.u32 %s400_s13, 4  ;;  %s1134_s24 = sshll.u32 (!%p410_p4), %s1685_s10, 3  ;;  %s403_s20 = int_to_ptr.hbm [resolvable:$true] %s402_s20 }
  0x32   : > { %1223 = dma.hbm_to_vmem [thread:$0]  (!%p1221_p0), %s403_s20, 128, %s405_s14, %s391_s21  }
  0x33   : > { %s416_s29 = scalar_lea.sflag (!%p410_p4), [#allocation3], %s1685_s10  ;;  %s419_s30 = scalar_lea.vmem (!%p410_p4), [#allocation2], %s1134_s24 }
  0x35   : > { %1471 = dma.done.wait (%p1654_p8), %s416_s29, 128  }
  0x36   : > { %1473 = vsyncadd (%p1654_p8), %s416_s29, 4294967168  ;;  %vm473_vm0 = vcmask 523264   ;;  %v472_v0 = vld [vmem:[%s419_s30] sm:$0xff]  ;;  %v1514_v2 = vmov 64.0   ;;  %s2031_s3 = sld [smem:[#allocation23_spill]]  ;;  %s2002_s29 = smov 64  }
  0x37   : > { %v474_v1 = vsel %vm473_vm0, %v472_v0, 0.0  ;;  %1316 = vrcp.f32 %v1514_v2  ;;  %s2032_s4 = sld [smem:[#allocation24_spill]]  ;;  %v1312_v41 = vld [vmem:[%s1984_s8] ss:$0 sm:$0xff]  ;;  %s1805_s12 = sshll.u32 %s1685_s10, 4  ;;  %vm851_vm5 = vcmask 125952  }
  0x38   : > { %475 = vadd.xlane.f32.xlu0 %v474_v1  ;;  %s2033_s1 = sld [smem:[#allocation21_spill]]  ;;  %s1812_s21 = scalar_lea.vmem [#allocation8], %s1805_s12  ;;  %vm629_vm6 = vcmask 1043456   ;;  %vm625_vm7 = vcmask 31744  }
  0x39   : > { %s2034_s2 = sld [smem:[#allocation22_spill]]  ;;  %s1516_s25 = smov 112  }
  0x3a   : > { %s2035_s5 = sld [smem:[#allocation25_spill]]  ;;  %s2001_s24 = smov 80  }
  0x3b   : > { %s2000_s30 = smov 96   ;;  %s1854_s14 = scalar_lea.vmem [#allocation5], %s1805_s12 }
  0x3c   : > { %v1164_v14 = vld [vmem:[%s2031_s3 + $0x30] sm:$0xf]  ;;  %v1211_v15 = vld [vmem:[%s2031_s3 + $0x34] sm:$0xf0]  ;;  %v1210_v16 = vld [vmem:[%s2031_s3 + $0x34] sm:$0xf] }
  0x3d   : > { %v1317_v3 = vpop.eup %1316  ;;  %v1165_v17 = vor.u32 %v1211_v15, %v1164_v14  ;;  %v1166_v18 = vld [vmem:[%s2031_s3 + $0x38] sm:$0xf0]  ;;  %v1156_v20 = vld [vmem:[%s2031_s3 + $0x20] sm:$0xf]  ;;  %v1209_v21 = vld [vmem:[%s2031_s3 + $0x24] sm:$0xf0] }
  0x3e   : > { %v478_v4 = vmul.f32 64.0, %v1317_v3  ;;  %vm482_vm1 = vweird.f32 %v1317_v3  ;;  %v1169_v19 = vor.u32 %v1210_v16, %v1166_v18  ;;  %v1208_v22 = vld [vmem:[%s2031_s3 + $0x24] sm:$0xf]  ;;  %v1157_v23 = vor.u32 %v1209_v21, %v1156_v20  ;;  %v1158_v24 = vld [vmem:[%s2031_s3 + $0x28] sm:$0xf0]  ;;  %v1750_v38 = vld [vmem:[%s2032_s4 + $0x38] sm:$0xff] }
  0x3f   : > { %569 = vmatpush.bf16.msra.mxu0 %v1165_v17  ;;  %v1161_v25 = vor.u32 %v1208_v22, %v1158_v24  ;;  %v1148_v26 = vld [vmem:[%s2031_s3 + $0x10] sm:$0xf]  ;;  %v1207_v27 = vld [vmem:[%s2031_s3 + $0x14] sm:$0xf0]  ;;  %v1206_v28 = vld [vmem:[%s2031_s3 + $0x14] sm:$0xf]  ;;  %613 = vmatpush.msra.mxu2 %v1750_v38 }
  0x40   : > { %v479_v5 = vsub.f32 1.0, %v478_v4  ;;  %582 = vmatpush.bf16.msra.mxu1 %v1169_v19  ;;  %v1149_v29 = vor.u32 %v1207_v27, %v1148_v26  ;;  %v1150_v30 = vld [vmem:[%s2031_s3 + $0x18] sm:$0xf0]  ;;  %v1140_v31 = vld [vmem:[%s2031_s3] sm:$0xf]  ;;  %v1755_v39 = vld [vmem:[%s2032_s4 + $0x30] sm:$0xff] }
  0x41   : > { %v1205_v32 = vld [vmem:[%s2031_s3 + $0x4] sm:$0xf0]  ;;  %v1153_v33 = vor.u32 %v1206_v28, %v1150_v30  ;;  %v1204_v34 = vld [vmem:[%s2031_s3 + $0x4] sm:$0xf]  ;;  %v1142_v35 = vld [vmem:[%s2031_s3 + $0x8] sm:$0xf0]  ;;  %614 = vmatpush.msra.mxu2 %v1755_v39 }
  0x42   : > { %v480_v6 = vmul.f32 %v1317_v3, %v479_v5  ;;  %v1141_v36 = vor.u32 %v1205_v32, %v1140_v31  ;;  %v1145_v37 = vor.u32 %v1204_v34, %v1142_v35  ;;  %v1765_v43 = vld [vmem:[%s2032_s4 + $0x28] sm:$0xff]  ;;  %v1773_v45 = vld [vmem:[%s2032_s4 + $0x20] sm:$0xff]  ;;  %v594_v46 = vld [vmem:[%s2032_s4 + $0x18] sm:$0xff]  ;;  %s2036_s15 = sld [smem:[#allocation14_spill]]  ;;  %s932_s19 = sshll.u32 %s1854_s14, 4  ;;  %s933_s19 = int_to_ptr.vmem [resolvable:$true] %s932_s19 }
  0x43   : > { %570 = vmatpush.bf16.msra.mxu0 %v1157_v23  ;;  %615 = vmatpush.msra.mxu2 %v1765_v43  ;;  %v593_v47 = vld [vmem:[%s2032_s4 + $0x10] sm:$0xff]  ;;  %v592_v48 = vld [vmem:[%s2032_s4 + $0x8] sm:$0xff]  ;;  %v1310_v55 = vld [vmem:[%s2033_s1] ss:$0 sm:$0xff]  ;;  %s2037_s17 = sld [smem:[#allocation13_spill]]  ;;  %s1519_s16 = smov 48  }
  0x44   : > { %v481_v7 = vadd.f32 %v1317_v3, %v480_v6  ;;  %583 = vmatpush.bf16.msra.mxu1 %v1161_v25  ;;  %v1311_v58 = vld [vmem:[%s2034_s2] ss:$0 sm:$0xff]  ;;  %s2039_s0 = sld [smem:[#allocation26_spill]]  ;;  %s1520_s2 = smov 16  }
  0x45   : > { %616 = vmatpush.msra.mxu2 %v1773_v45  ;;  %v591_v62 = vld [vmem:[%s2032_s4] sm:$0xff]  ;;  %s1521_s3 = smov 32  }
  0x46   : > { %v483_v8 = vsel %vm482_vm1, %v1317_v3, %v481_v7  ;;  %v599_v4 = vld [vmem:[%s2035_s5] sm:$0xf] }
  0x47   : > { %571 = vmatpush.bf16.msra.mxu0 %v1149_v29  ;;  %617 = vmatpush.msra.mxu2 %v594_v46  ;;  %v1313_v15 = vld [vmem:[%s1985_s9] ss:$0 sm:$0xff] }
  0x48   : > { %584 = vmatpush.bf16.msra.mxu1 %v1153_v33  ;;  %1173 = vmatpush.msk.msra.mxu3 %vm629_vm6, %v599_v4  ;;  %v1314_v27 = vld [vmem:[%s1982_s6] ss:$0 sm:$0xff]  ;;  %s1196_s18 = sshll.u32 %s2036_s15, 3 }
  0x49   : > { %618 = vmatpush.msra.mxu2 %v593_v47  ;;  %v1315_v30 = vld [vmem:[%s1983_s7] ss:$0 sm:$0xff]  ;;  %s929_s20 = sadd.s32 %s2037_s17, %s1196_s18 }
  0x4a   : > { %666 = vmatpush.msrb.mxu3 %v1750_v38 }
  0x4b   : > { %572 = vmatpush.bf16.msra.mxu0 %v1141_v36  ;;  %619 = vmatpush.msra.mxu2 %v592_v48 }
  0x4c   : > { %585 = vmatpush.bf16.msra.mxu1 %v1145_v37  ;;  %667 = vmatpush.msrb.mxu3 %v1755_v39 }
  0x4d   : > { %620 = vmatpush.msra.mxu2 %v591_v62 }
  0x4e   : > { %668 = vmatpush.msrb.mxu3 %v1765_v43 }
  0x4f   : > { %734 = vmatpush.msrb.mxu0 %v1750_v38  ;;  %1176 = vmatpush.msk.msrb.mxu2 %vm629_vm6, %v599_v4 }
  0x50   : > { %788 = vmatpush.msrb.mxu1 %v1750_v38  ;;  %669 = vmatpush.msrb.mxu3 %v1773_v45 }
  0x51   : > { %735 = vmatpush.msrb.mxu0 %v1755_v39 }
  0x52   : > { %789 = vmatpush.msrb.mxu1 %v1755_v39  ;;  %670 = vmatpush.msrb.mxu3 %v594_v46 }
  0x53   : > { %736 = vmatpush.msrb.mxu0 %v1765_v43 }
  0x54   : > { %790 = vmatpush.msrb.mxu1 %v1765_v43  ;;  %671 = vmatpush.msrb.mxu3 %v593_v47 }
  0x55   : > { %737 = vmatpush.msrb.mxu0 %v1773_v45 }
  0x56   : > { %791 = vmatpush.msrb.mxu1 %v1773_v45  ;;  %672 = vmatpush.msrb.mxu3 %v592_v48 }
  0x57   : > { %738 = vmatpush.msrb.mxu0 %v594_v46 }
  0x58   : > { %792 = vmatpush.msrb.mxu1 %v594_v46  ;;  %673 = vmatpush.msrb.mxu3 %v591_v62 }
  0x59   : > { %739 = vmatpush.msrb.mxu0 %v593_v47 }
  0x5a   : > { %793 = vmatpush.msrb.mxu1 %v593_v47 }
  0x5b   : > { %740 = vmatpush.msrb.mxu0 %v592_v48 }
  0x5c   : > { %794 = vmatpush.msrb.mxu1 %v592_v48 }
  0x5d   : > { %741 = vmatpush.msrb.mxu0 %v591_v62 }
  0x5e   : > { %795 = vmatpush.msrb.mxu1 %v591_v62 }
  0xab   : > { %v476_v9 = vpop.xlane.xlu0 %475 }
  0xac   : > { %v484_v10 = vmul.f32 %v483_v8, %v476_v9 }
  0xae   : > { %v1694_v11 = vsub.f32 %v472_v0, %v484_v10 }
  0xb0   : > { %v486_v12 = vmul.f32 %v1694_v11, %v1694_v11 }
  0xb2   : > { %v487_v13 = vsel %vm473_vm0, %v486_v12, 0.0 }
  0xb3   : > { %488 = vadd.xlane.f32.xlu0 %v487_v13 }
  0xc7   : > { %840 = vrot.lane.b32.xlu0 %v1312_v41, %s2002_s29 }
 0x126   : > { %v489_v40 = vpop.xlane.xlu0 %488 }
 0x127   : > { %v490_v42 = vmul.f32 %v489_v40, %v483_v8 }
 0x129   : > { %v491_v44 = vadd.f32 1e-05, %v490_v42 }
 0x12b   : > { %1318 = vrsqrt.f32 %v491_v44  ;;  %vm498_vm3 = vweird.f32 %v491_v44 }
 0x131   : > { %v1319_v49 = vpop.eup %1318 }
 0x132   : > { %v493_v50 = vmul.f32 %v1319_v49, %v491_v44  ;;  %vm499_vm2 = vweird.f32 %v1319_v49 }
 0x133   : > { %vm500_vm4 = vmor %vm498_vm3, %vm499_vm2 }
 0x134   : > { %v494_v51 = vmul.f32 %v1319_v49, %v493_v50 }
 0x136   : > { %v495_v52 = vmul.f32 0.5, %v494_v51 }
 0x138   : > { %v496_v53 = vsub.f32 1.5, %v495_v52 }
 0x139   : > { %v1828_v5 = vpop.permute.xlu0 %840 }
 0x13a   : > { %v497_v54 = vmul.f32 %v1319_v49, %v496_v53 }
 0x13c   : > { %v501_v56 = vsel %vm500_vm4, %v1319_v49, %v497_v54 }
 0x13d   : > { %v502_v57 = vmul.f32 %v501_v56, %v1694_v11 }
 0x13f   : > { %v507_v59 = vmul.f32 %v1310_v55, %v502_v57 }
 0x141   : > { %v512_v60 = vadd.f32 %v1311_v58, %v507_v59 }
 0x143   : > { %v513_v61 = vpack.c.bf16 %v512_v60, %v512_v60 }
 0x145   : > { %1170 = vmatmul.msk.bf16.vlgmr.msra.gmra.mxu0 %vm473_vm0, %v513_v61  ;;  %1171 = vmatmul.msk.bf16.vlgmr.msra.gmra.mxu1 %vm473_vm0, %v513_v61 }
 0x1c2   : > { %v574_v63 = vpop.f32.mrf.mxu0  ;;  %v587_v0 = vpop.f32.mrf.mxu1 }
 0x1c3   : > { %v1807_v1 = vpack.c.bf16 %v587_v0, %v587_v0  ;;  %722 = vrot.lane.b32.xlu1 %v574_v63, %s2002_s29  ;;  %1172 = vmatmul.msk.f32.vlgmr.msra.gmra.mxu2 %vm473_vm0, %v574_v63 }
 0x1c4   : > { %1182 = vmatpush.msk.msra.mxu2 %vm629_vm6, %v599_v4 }
 0x1c5   : > { %860 = vst.msk [vmem:[%s1812_s21] sm:$0xf] %vm851_vm5, %v1807_v1  ;;  %873 = vrot.lane.b32.xlu0 %v1807_v1, %s1516_s25 }
 0x1ca   : > { %v576_v2 = vpop.f32.mrf.mxu0  ;;  %v589_v3 = vpop.f32.mrf.mxu1 }
 0x235   : > { %v723_v6 = vpop.permute.xlu1 %722 }
 0x236   : > { %1178 = vmatmul.msk.f32.vlgmr.msrb.gmra.mxu0 %vm473_vm0, %v723_v6 }
 0x237   : > { %v874_v7 = vpop.permute.xlu0 %873 }
 0x238   : > { %1186 = vst.msk [vmem:[%s1812_s21 + $0x4] sm:$0xf] %vm851_vm5, %v874_v7 }
 0x246   : > { %v622_v8 = vpop.f32.mrf.mxu2 }
 0x247   : > { %1174 = vmatmul.msk.f32.vlgmr.msra.gmra.mxu3 %vm625_vm7, %v622_v8 }
 0x248   : > { %1179 = vmatpush.msk.msra.mxu3 %vm629_vm6, %v599_v4 }
 0x2b3   : > { %v743_v12 = vpop.f32.mrf.mxu0 }
 0x2ca   : > { %v650_v9 = vpop.f32.mrf.mxu3 }
 0x2cb   : > { %v653_v10 = vsub.f32 %v574_v63, %v650_v9 }
 0x2cd   : > { %v654_v11 = vmul.f32 %v653_v10, %v653_v10 }
 0x2cf   : > { %1175 = vmatmul.msk.f32.vlgmr.msrb.gmra.mxu3 %vm473_vm0, %v654_v11 }
 0x2d7   : > { %1180 = vmatmul.msk.f32.vlgmr.msra.gmra.mxu3 %vm625_vm7, %v743_v12 }
 0x352   : > { %v675_v13 = vpop.f32.mrf.mxu3 }
 0x353   : > { %1177 = vmatmul.msk.f32.vlgmr.msrb.gmra.mxu2 %vm625_vm7, %v675_v13 }
 0x35a   : > { %v766_v14 = vpop.f32.mrf.mxu3 }
 0x35b   : > { %770 = vrot.lane.b32.xlu1 %v766_v14, %s2002_s29 }
 0x363   : > { %846 = vrot.lane.b32.xlu1 %v1313_v15, %s2002_s29 }
 0x3cd   : > { %v771_v16 = vpop.permute.xlu1 %770 }
 0x3ce   : > { %v773_v17 = vsub.f32 %v574_v63, %v771_v16 }
 0x3d0   : > { %v774_v18 = vmul.f32 %v773_v17, %v773_v17 }
 0x3d2   : > { %776 = vrot.lane.b32.xlu2 %v774_v18, %s2002_s29 }
 0x3d5   : > { %v847_v35 = vpop.permute.xlu1 %846 }
 0x3d6   : > { %v698_v19 = vpop.f32.mrf.mxu2 }
 0x3d7   : > { %v699_v20 = vadd.f32 1e-05, %v698_v19 }
 0x3d9   : > { %1320 = vrsqrt.f32 %v699_v20  ;;  %vm707_vm9 = vweird.f32 %v699_v20 }
 0x3df   : > { %v1321_v21 = vpop.eup %1320 }
 0x3e0   : > { %v702_v22 = vmul.f32 %v1321_v21, %v699_v20  ;;  %vm708_vm8 = vweird.f32 %v1321_v21 }
 0x3e1   : > { %vm709_vm10 = vmor %vm707_vm9, %vm708_vm8 }
 0x3e2   : > { %v703_v23 = vmul.f32 %v1321_v21, %v702_v22 }
 0x3e4   : > { %v704_v24 = vmul.f32 0.5, %v703_v23 }
 0x3e6   : > { %v705_v25 = vsub.f32 1.5, %v704_v24 }
 0x3e8   : > { %v706_v26 = vmul.f32 %v1321_v21, %v705_v25 }
 0x3ea   : > { %v710_v28 = vsel %vm709_vm10, %v1321_v21, %v706_v26 }
 0x3eb   : > { %v711_v29 = vmul.f32 %v710_v28, %v653_v10 }
 0x3ed   : > { %v715_v31 = vmul.f32 %v1314_v27, %v711_v29 }
 0x3ef   : > { %v719_v32 = vadd.f32 %v1315_v30, %v715_v31 }
 0x3f1   : > { %v850_v33 = vpack.c.bf16 %v719_v32, %v719_v32 }
 0x3f3   : > { %893 = vrot.lane.b32.xlu0 %v850_v33, %s2001_s24  ;;  %878 = vrot.lane.b32.xlu1 %v850_v33, %s2000_s30  ;;  %852 = vst.msk [vmem:[%s1854_s14] sm:$0xf] %vm851_vm5, %v850_v33 }
 0x42c   : > { %v777_v34 = vpop.permute.xlu2 %776 }
 0x42d   : > { %1181 = vmatmul.msk.f32.vlgmr.msrb.gmra.mxu1 %vm473_vm0, %v777_v34 }
 0x465   : > { %v879_v36 = vpop.permute.xlu1 %878  ;;  %v894_v37 = vpop.permute.xlu0 %893 }
 0x466   : > { %1187 = vst.msk [vmem:[%s1854_s14 + $0x8] sm:$0xf] %vm851_vm5, %v879_v36 }
 0x467   : > { %1190 = vst.msk [vmem:[%s1854_s14 + $0xc] sm:$0xf] %vm851_vm5, %v894_v37 }
 0x4aa   : > { %v797_v38 = vpop.f32.mrf.mxu1 }
 0x4ab   : > { %1183 = vmatmul.msk.f32.vlgmr.msra.gmra.mxu2 %vm625_vm7, %v797_v38 }
 0x52e   : > { %v820_v39 = vpop.f32.mrf.mxu2 }
 0x52f   : > { %v821_v40 = vadd.f32 1e-05, %v820_v39 }
 0x531   : > { %1322 = vrsqrt.f32 %v821_v40  ;;  %vm829_vm12 = vweird.f32 %v821_v40 }
 0x537   : > { %v1323_v41 = vpop.eup %1322 }
 0x538   : > { %v824_v42 = vmul.f32 %v1323_v41, %v821_v40  ;;  %vm830_vm11 = vweird.f32 %v1323_v41 }
 0x539   : > { %vm831_vm13 = vmor %vm829_vm12, %vm830_vm11 }
 0x53a   : > { %v825_v43 = vmul.f32 %v1323_v41, %v824_v42 }
 0x53c   : > { %v826_v44 = vmul.f32 0.5, %v825_v43 }
 0x53e   : > { %v827_v45 = vsub.f32 1.5, %v826_v44 }
 0x540   : > { %v828_v46 = vmul.f32 %v1323_v41, %v827_v45 }
 0x542   : > { %v832_v47 = vsel %vm831_vm13, %v1323_v41, %v828_v46 }
 0x543   : > { %834 = vrot.lane.b32.xlu2 %v832_v47, %s2002_s29 }
 0x54b   : > { %862 = vrot.lane.b32.xlu2 %v850_v33, %s1516_s25  ;;  %s1873_s25 = sshll.u32 %s929_s20, 2  ;;  %s1374_s20 = scalar_lea.hbm %s2039_s0, 64 }
 0x54c   : > { %s931_s1 = scalar_lea.hbm %s2039_s0, %s1873_s25 }
 0x54d   : > { %s934_s15 = sshll.u32 %s931_s1, 4  ;;  %s935_s15 = int_to_ptr.hbm [resolvable:$true] %s934_s15 }
 0x59d   : > { %v835_v48 = vpop.permute.xlu2 %834 }
 0x59e   : > { %v837_v49 = vmul.f32 %v835_v48, %v773_v17 }
 0x5a0   : > { %v843_v50 = vmul.f32 %v1828_v5, %v837_v49 }
 0x5a2   : > { %v849_v51 = vadd.f32 %v847_v35, %v843_v50 }
 0x5a4   : > { %v853_v52 = vpack.c.bf16 %v849_v51, %v849_v51 }
 0x5a5   : > { %v863_v53 = vpop.permute.xlu2 %862 }
 0x5a6   : > { %1184 = vst.msk [vmem:[%s1854_s14 + $0x4] sm:$0xf] %vm851_vm5, %v863_v53  ;;  %867 = vrot.lane.b32.xlu1 %v853_v52, %s1519_s16  ;;  %855 = vrot.lane.b32.xlu2 %v853_v52, %s2002_s29  ;;  %s909_s14 = scalar_lea.sflag [#allocation4], %s1685_s10  ;;  %s1368_s16 = sshra.s32 %s935_s15, 4  ;;  %s1369_s16 = int_to_ptr.hbm [resolvable:$true] %s1368_s16 }
 0x5a7   : > { %s1370_s29 = scalar_lea.hbm %s1369_s16, 16  ;;  %p1375_p7 = scmp.lt.s32.totalorder %s1369_s16, %s2039_s0 }
 0x5a8   : > { %p1371_p3 = scmp.ne.s32.totalorder %s1369_s16, %s1370_s29  ;;  %p1376_p8 = scmp.lt.s32.totalorder %s1374_s20, %s1370_s29 }
 0x5aa   : > { %p1372_p5 = pnand %p1371_p3, %p1658_p9  ;;  %p1377_p10 = por %p1376_p8, %p1375_p7 }
 0x5ac   : > { %p1373_p6 = pneg %p1372_p5 }
 0x5ae   : > { %898 = vrot.lane.b32.xlu1 %v853_v52, %s1520_s2  ;;  %883 = vrot.lane.b32.xlu2 %v853_v52, %s1521_s3  ;;  %p1378_p11 = pnand %p1377_p10, %p1373_p6 }
 0x5b0   : > { %1381 = shalt.err (!%p1378_p11)
}
 0x5b1   : > { %s2004_s1 = smov 128   ;;  %s2040_s2 = sld [smem:[#allocation15_spill]] }
 0x5b2   : > { %s2006_s3 = smov 4   ;;  %s2041_s10 = smov 64  }
 0x5b3   : > { %1214 = dma.vmem_to_hbm [thread:$0]  (%p1658_p9), %s933_s19, 256, %s935_s15, %s909_s14, %s2041_s10, %s2004_s1, %s2006_s3  }
 0x5b4   : > { %s2042_s17 = smov 80   ;;  %s2043_s16 = smov 96  }
 0x5b5   : > { %s463_s29 = scalar_lea.vmem [#allocation6], %s1805_s12  ;;  %s2044_s14 = sld [smem:[#allocation27_spill]] }
 0x5b6   : > { %903 = vrot.lane.b32.xlu1 %v1807_v1, %s2042_s17  ;;  %888 = vrot.lane.b32.xlu2 %v1807_v1, %s2043_s16  ;;  %s950_s20 = sshll.u32 %s463_s29, 4  ;;  %s2045_s16 = sld [smem:[#allocation28_spill]]  ;;  %s951_s20 = int_to_ptr.vmem [resolvable:$true] %s950_s20 }
 0x5b7   : > { %s913_s24 = sand.u32 1, %s2040_s2  }
 0x5b8   : > { %s1913_s3 = scalar_lea.sflag [#allocation7], %s913_s24 }
 0x5bb   : > { %s949_s18 = scalar_lea.hbm %s2044_s14, %s1873_s25  ;;  %s1402_s15 = scalar_lea.hbm %s2044_s14, 64 }
 0x5bc   : > { %s952_s12 = sshll.u32 %s949_s18, 4  ;;  %s967_s1 = scalar_lea.hbm %s2045_s16, %s1873_s25  ;;  %s953_s12 = int_to_ptr.hbm [resolvable:$true] %s952_s12 }
 0x5bd   : > { %s1396_s0 = sshra.s32 %s953_s12, 4  ;;  %s1397_s0 = int_to_ptr.hbm [resolvable:$true] %s1396_s0 }
 0x5be   : > { %s1398_s4 = scalar_lea.hbm %s1397_s0, 16  ;;  %p1403_p2 = scmp.lt.s32.totalorder %s1397_s0, %s2044_s14 }
 0x5bf   : > { %p1399_p13 = scmp.ne.s32.totalorder %s1397_s0, %s1398_s4  ;;  %p1404_p4 = scmp.lt.s32.totalorder %s1402_s15, %s1398_s4 }
 0x5c1   : > { %p1400_p0 = pnand %p1399_p13, %p1658_p9  ;;  %p1405_p3 = por %p1404_p4, %p1403_p2 }
 0x5c3   : > { %p1401_p1 = pneg %p1400_p0 }
 0x5c5   : > { %p1406_p5 = pnand %p1405_p3, %p1401_p1 }
 0x600   : > { %v856_v54 = vpop.permute.xlu2 %855 }
 0x601   : > { %858 = vst.msk [vmem:[%s463_s29] sm:$0xf] %vm851_vm5, %v856_v54 }
 0x608   : > { %v884_v55 = vpop.permute.xlu2 %883 }
 0x609   : > { %1188 = vst.msk [vmem:[%s463_s29 + $0x8] sm:$0xf] %vm851_vm5, %v884_v55 }
 0x610   : > { %v889_v56 = vpop.permute.xlu2 %888 }
 0x611   : > { %1189 = vst.msk [vmem:[%s1812_s21 + $0x8] sm:$0xf] %vm851_vm5, %v889_v56 }
 0x618   : > { %v868_v57 = vpop.permute.xlu1 %867 }
 0x619   : > { %1185 = vst.msk [vmem:[%s463_s29 + $0x4] sm:$0xf] %vm851_vm5, %v868_v57 }
 0x620   : > { %v899_v58 = vpop.permute.xlu1 %898 }
 0x621   : > { %1191 = vst.msk [vmem:[%s463_s29 + $0xc] sm:$0xf] %vm851_vm5, %v899_v58 }
 0x622   : > { %1409 = shalt.err (!%p1406_p5)
}
 0x623   : > { %s2046_s25 = smov 4   ;;  %s2047_s29 = smov 128  }
 0x624   : > { %1215 = dma.vmem_to_hbm [thread:$0]  (%p1658_p9), %s951_s20, 256, %s953_s12, %s1913_s3, %s2041_s10, %s2047_s29, %s2046_s25  }
 0x625   : > { %s968_s24 = sshll.u32 %s1812_s21, 4  ;;  %s970_s30 = sshll.u32 %s967_s1, 4  ;;  %s969_s24 = int_to_ptr.vmem [resolvable:$true] %s968_s24  ;;  %s971_s30 = int_to_ptr.hbm [resolvable:$true] %s970_s30 }
 0x626   : > { %s1424_s0 = sshra.s32 %s971_s30, 4  ;;  %s1430_s2 = scalar_lea.hbm %s2045_s16, 64  ;;  %s1425_s0 = int_to_ptr.hbm [resolvable:$true] %s1424_s0 }
 0x627   : > { %s1426_s4 = scalar_lea.hbm %s1425_s0, 16  ;;  %p1431_p10 = scmp.lt.s32.totalorder %s1425_s0, %s2045_s16 }
 0x628   : > { %v904_v59 = vpop.permute.xlu1 %903  ;;  %p1427_p6 = scmp.ne.s32.totalorder %s1425_s0, %s1426_s4  ;;  %p1432_p11 = scmp.lt.s32.totalorder %s1430_s2, %s1426_s4 }
 0x629   : > { %1192 = vst.msk [vmem:[%s1812_s21 + $0xc] sm:$0xf] %vm851_vm5, %v904_v59 }
 0x62a   : > { %p1428_p7 = pnand %p1427_p6, %p1658_p9  ;;  %p1433_p13 = por %p1432_p11, %p1431_p10 }
 0x62c   : > { %p1429_p8 = pneg %p1428_p7 }
 0x62e   : > { %p1434_p0 = pnand %p1433_p13, %p1429_p8 }
 0x630   : > { %1437 = shalt.err (!%p1434_p0)
}
 0x631   : > { %1216 = dma.vmem_to_hbm [thread:$0]  (%p1658_p9), %s969_s24, 256, %s971_s30, %s1913_s3, %s2041_s10, %s2047_s29, %s2046_s25  }
 0x632 PF: > { %s2048_s21 = sld [smem:[#allocation12_spill]]  ;;  %p1235_p1 = scmp.ge.s32.totalorder %s1512_s28, 2 }
 0x634   : > { %p1225_p2 = pnand %p1235_p1, %p1666_p12 }
 0x636   : > { %p1226_p4 = pneg %p1225_p2 }
 0x638   : > { %s985_s12 = sand.u32 1, %s2048_s21  }
 0x639   : > { %s986_s15 = scalar_lea.sflag [#allocation4], %s985_s12 }
 0x63a   : > { %1475 = dma.done.wait (%p1226_p4), %s986_s15, 256  }
 0x63b   : > { %1477 = vsyncadd (%p1226_p4), %s986_s15, 4294967040  ;;  %s2050_s18 = sadd.s32 4294967294, %s1512_s28  }
 0x63c   : > { %s995_s13 = sand.u32 1, %s2050_s18  }
 0x63d   : > { %s996_s0 = scalar_lea.sflag [#allocation7], %s995_s13 }
 0x63e   : > { %1479 = dma.done.wait (%p1226_p4), %s996_s0, 512  }
 0x63f   : > { %1481 = vsyncadd (%p1226_p4), %s996_s0, 4294966784  ;;  %s32_s28 = sadd.s32 1, %s1512_s28   ;;  %s2051_s3 = sld [smem:[#allocation16_spill]] }
 0x640   : > { %p29_p9 = scmp.ge.s32.totalorder %s32_s28, 6   ;;  %s2052_s10 = sld [smem:[#allocation17_spill]] }
 0x641   : > { %s2053_s21 = smov %s1488_s22  ;;  %s2054_s22 = smov %s1492_s23 }
 0x642   : > { %s2055_s23 = smov %s1673_s11  ;;  %s2056_s24 = smov %s1504_s26 }
 0x643   : > { %s2057_s25 = smov %s1508_s27  ;;  %31 = sbr.rel (!%p29_p9) target bundleno = 19 (0x13), region = 146 }
 0x645   : > { %s2058_s26 = smov %s2051_s3 }
 0x646   : > { %s2059_s27 = smov %s2052_s10 }
 0x648   :  { %1012 = vsyncpa [#allocation3], 1 }
 0x649   :  { %1014 = vsyncpa [#allocation3 + $0x1], 1 }
 0x64a   :  { %1015 = vsyncpa [#allocation4], 1 }
 0x64b   :  { %1017 = vsyncpa [#allocation4 + $0x1], 1 }
 0x64c   :  { %1018 = vsyncpa [#allocation7], 1 }
 0x64d   :  { %1020 = vsyncpa [#allocation7 + $0x1], 1 }

</bundles_post_ra>
